<compile_context>
chip_gen: v5e
topology: v5e:2x2
jax: 0.10.0
libtpu: 0.0.40
codegen_flags: <defaults>
</compile_context>

<pallas_src>
import functools

import jax
import jax.numpy as jnp
from jax.experimental import pallas as pl
from jax.experimental.pallas import tpu as pltpu


def _round_up(x: int, m: int) -> int:
    return ((x + m - 1) // m) * m


def _vmem_capacity_bytes() -> int:
    try:
        return int(pltpu.get_tpu_info().vmem_capacity_bytes)
    except Exception:
        return 64 * 1024 * 1024  # conservative (v7x per-core VMEM)


# ---------------------------------------------------------------------------
# Kernel 1: feature transform  H = X @ W^T            (N, C_in) -> (N, C_out)
# ---------------------------------------------------------------------------
def _feature_transform_kernel(x_ref, wt_ref, h_ref):
    h_ref[...] = jnp.dot(
        x_ref[...], wt_ref[...], preferred_element_type=jnp.float32
    ).astype(h_ref.dtype)


def _feature_transform(x, w_t, out_dtype):
    n, c_in = x.shape
    c_out = w_t.shape[1]

    cap = _vmem_capacity_bytes()
    budget = int(0.70 * cap)
    margin = 2 << 20
    c_in_pad = _round_up(c_in, 128)
    c_out_pad = _round_up(c_out, 128)
    w_bytes = 2 * _round_up(c_in, 8) * c_out_pad * w_t.dtype.itemsize
    per_row = (2 * c_in_pad * x.dtype.itemsize
               + 2 * c_out_pad * jnp.dtype(out_dtype).itemsize)
    th_max = max(8, (budget - w_bytes - margin) // per_row)
    th = min(n, 1024, max(8, (th_max // 8) * 8))
    if th >= n:
        th = n  # single full-extent row tile

    need = 2 * th * c_in_pad * x.dtype.itemsize + w_bytes \
        + 2 * th * c_out_pad * jnp.dtype(out_dtype).itemsize + margin
    vmem_limit = int(min(max(need, 32 << 20), int(0.9 * cap)))

    return pl.pallas_call(
        _feature_transform_kernel,
        out_shape=jax.ShapeDtypeStruct((n, c_out), out_dtype),
        grid_spec=pltpu.PrefetchScalarGridSpec(
            num_scalar_prefetch=0,
            grid=(pl.cdiv(n, th),),
            in_specs=[
                pl.BlockSpec((th, c_in), lambda i: (i, 0)),     # X row tile
                pl.BlockSpec((c_in, c_out), lambda i: (0, 0)),  # W^T resident
            ],
            out_specs=pl.BlockSpec((th, c_out), lambda i: (i, 0)),
        ),
        compiler_params=pltpu.CompilerParams(
            dimension_semantics=("parallel",),
            vmem_limit_bytes=vmem_limit),
    )(x, w_t)


# ---------------------------------------------------------------------------
# Kernel 2: propagation  out = A_hat @ H              (N, N) x (N, C_out)
#   grid = (row tiles [parallel], K tiles [arbitrary reduction])
# ---------------------------------------------------------------------------
def _aggregate_kernel(a_ref, h_ref, o_ref, acc_ref):
    @pl.when(pl.program_id(1) == 0)
    def _():
        acc_ref[...] = jnp.zeros_like(acc_ref)

    acc_ref[...] += jnp.dot(a_ref[...], h_ref[...],
                            preferred_element_type=jnp.float32)

    @pl.when(pl.program_id(1) == pl.num_programs(1) - 1)
    def _():
        o_ref[...] = acc_ref[...].astype(o_ref.dtype)


def _plan_aggregate(n, c_out, a_item, h_item, out_item):
    """Choose (tile_m, tile_k, n_pad) within the VMEM budget.

    Path 1 (preferred): full-width K (support fully resident across row tiles,
    a single reduction step).  Path 2: K-tiled reduction for very large N;
    requires tile_k to divide the (zero-padded) N so the reduction axis never
    reads unspecified ragged-block data.
    """
    cap = _vmem_capacity_bytes()
    budget = int(0.70 * cap)
    c_pad = _round_up(c_out, 128)
    margin = 2 << 20

    def need(tm, tk):
        a_b = 2 * tm * tk * a_item                 # double-buffered A stream
        h_b = 2 * tk * c_pad * h_item              # support tile
        o_b = 2 * tm * c_pad * out_item            # output tile
        acc_b = tm * c_pad * 4                     # f32 accumulator scratch
        return a_b + h_b + o_b + acc_b + margin

    # --- Path 1: full-width K, resident support.
    if need(8, n) <= budget:
        per_row = 2 * n * a_item + 2 * c_pad * out_item + c_pad * 4
        tm_max = max(8, (budget - 2 * n * c_pad * h_item - margin) // per_row)
        tm = min(n, 2048, max(8, (tm_max // 8) * 8))
        if tm >= n:
            tm = n
        return tm, n, n

    # --- Path 2: K-tiled reduction (very large N / small VMEM).
    tm, tk = 1024, 4096
    while tk > 128 and need(tm, tk) > budget:
        tk = max(128, ((tk // 2) // 128) * 128)
    while tm > 8 and need(tm, tk) > budget:
        tm = max(8, ((tm // 2) // 8) * 8)
    n_pad = _round_up(n, tk)   # pad so tile_k divides N exactly
    return tm, tk, n_pad


def _aggregate(a, h, *, tile_m, tile_k, out_dtype):
    n_pad = a.shape[0]
    c_out = h.shape[1]
    c_pad = _round_up(c_out, 128)

    need = (2 * tile_m * tile_k * a.dtype.itemsize
            + 2 * tile_k * c_pad * h.dtype.itemsize
            + 2 * tile_m * c_pad * jnp.dtype(out_dtype).itemsize
            + tile_m * c_pad * 4 + (4 << 20))
    vmem_limit = int(min(max(need, 32 << 20),
                         int(0.9 * _vmem_capacity_bytes())))

    return pl.pallas_call(
        _aggregate_kernel,
        out_shape=jax.ShapeDtypeStruct((n_pad, c_out), out_dtype),
        grid_spec=pltpu.PrefetchScalarGridSpec(
            num_scalar_prefetch=0,
            grid=(pl.cdiv(n_pad, tile_m), pl.cdiv(n_pad, tile_k)),
            in_specs=[
                # Streamed A_hat tile (the HBM-bound operand).
                pl.BlockSpec((tile_m, tile_k), lambda i, k: (i, k)),
                # Support tile; constant block index when tile_k == N, so it
                # stays resident in VMEM across all row tiles.
                pl.BlockSpec((tile_k, c_out), lambda i, k: (k, 0)),
            ],
            out_specs=pl.BlockSpec((tile_m, c_out), lambda i, k: (i, 0)),
            scratch_shapes=[pltpu.VMEM((tile_m, c_out), jnp.float32)],
        ),
        compiler_params=pltpu.CompilerParams(
            dimension_semantics=("parallel", "arbitrary"),
            vmem_limit_bytes=vmem_limit),
    )(a, h)


@functools.partial(jax.jit, static_argnames=("use_bf16",))
def graph_convolution(x, a_hat, w_t, *, use_bf16=True):
    """GCN layer: equivalent to (A_hat @ X) @ W^T, computed as A_hat @ (X @ W^T).

    x:     (N, C_in)      node features
    a_hat: (N, N)         normalized adjacency (dense representation)
    w_t:   (C_in, C_out)  transposed nn.Linear weight (bias-free)

    use_bf16=True streams the adjacency and support in bf16 (f32 MXU
    accumulation); use_bf16=False keeps everything in f32.
    """
    n, c_in = x.shape
    assert a_hat.shape == (n, n)
    assert w_t.shape[0] == c_in
    c_out = w_t.shape[1]
    out_dtype = x.dtype

    a_dtype = jnp.bfloat16 if use_bf16 else jnp.float32
    h_dtype = jnp.bfloat16 if use_bf16 else jnp.float32

    tile_m, tile_k, n_pad = _plan_aggregate(
        n, c_out,
        jnp.dtype(a_dtype).itemsize,
        jnp.dtype(h_dtype).itemsize,
        jnp.dtype(out_dtype).itemsize)

    if n_pad != n:
        # Zero padding keeps the reduction exact (padded A cols / H rows are 0).
        pad = n_pad - n
        x_p = jnp.pad(x, ((0, pad), (0, 0)))
        a_p = jnp.pad(a_hat, ((0, pad), (0, pad)))
    else:
        x_p, a_p = x, a_hat

    h = _feature_transform(x_p, w_t, h_dtype)        # support = X @ W^T
    a_p = a_p.astype(a_dtype)
    out = _aggregate(a_p, h, tile_m=tile_m, tile_k=tile_k, out_dtype=out_dtype)
    return out[:n] if n_pad != n else out


def build_normalized_adjacency(key, n):
    """Random symmetric adjacency with self loops: D^-1/2 (A + I) D^-1/2."""
    a = (jax.random.uniform(key, (n, n)) < 0.1).astype(jnp.float32)
    a = jnp.maximum(a, a.T)                       # symmetrize
    a = a + jnp.eye(n, dtype=jnp.float32)         # self loops
    deg = jnp.sum(a, axis=1)
    d_inv_sqrt = 1.0 / jnp.sqrt(deg)
    return a * d_inv_sqrt[:, None] * d_inv_sqrt[None, :]


if __name__ == "__main__":
    N, C_IN, C_OUT = 128, 32, 16

    key = jax.random.PRNGKey(0)
    k_x, k_a, k_w = jax.random.split(key, 3)

    x = jax.random.normal(k_x, (N, C_IN), dtype=jnp.float32)
    a_hat = build_normalized_adjacency(k_a, N)

    # nn.Linear(C_in, C_out, bias=False): weight (C_out, C_in), U(-b, b),
    # b = 1/sqrt(C_in).  Deterministic in-script init; the kernel takes W^T.
    bound = 1.0 / jnp.sqrt(jnp.float32(C_IN))
    w = jax.random.uniform(k_w, (C_OUT, C_IN), dtype=jnp.float32,
                           minval=-bound, maxval=bound)
    w_t = w.T  # (C_in, C_out)

    # Reference in the original PyTorch association order.
    ref = (a_hat @ x) @ w_t

    # Default (bf16 stream, f32 accumulate) path: loose tolerance.
    out = jax.block_until_ready(graph_convolution(x, a_hat, w_t))
    assert out.shape == (N, C_OUT)
    assert out.dtype == x.dtype
    assert jnp.allclose(out, ref, atol=2e-2, rtol=2e-2)

    # f32 path: tight tolerance (only reassociation rounding differs).
    out_f32 = jax.block_until_ready(
        graph_convolution(x, a_hat, w_t, use_bf16=False))
    assert jnp.allclose(out_f32, ref, atol=1e-4, rtol=1e-4)

    print("KERNEL_OK")
</pallas_src>

<mosaic_0001>
module attributes {stable_mosaic.version = 11 : i64} {
  func.func @_feature_transform_kernel(%arg0: i32, %arg1: memref<128x32xf32, #tpu.memory_space<vmem>>, %arg2: memref<32x16xf32, #tpu.memory_space<vmem>>, %arg3: memref<128x16xbf16, #tpu.memory_space<vmem>>) attributes {dimension_semantics = [#tpu.dimension_semantics<parallel>], iteration_bounds = array<i64: 1>, scalar_prefetch = 0 : i64, scratch_operands = 0 : i64, tpu.core_type = #tpu.core_type<tc>, window_params = [{transform_indices = @transform_0, window_bounds = array<i64: 128, 32>}, {pipeline_mode = #tpu.pipeline_mode<synchronous>, transform_indices = @transform_1, window_bounds = array<i64: 32, 16>}, {transform_indices = @transform_2, window_bounds = array<i64: 128, 16>}]} {
    %c0 = arith.constant 0 : index
    %c0_0 = arith.constant 0 : index
    %0 = vector.load %arg1[%c0, %c0_0] : memref<128x32xf32, #tpu.memory_space<vmem>>, vector<128x32xf32>
    %c0_1 = arith.constant 0 : index
    %c0_2 = arith.constant 0 : index
    %1 = vector.load %arg2[%c0_1, %c0_2] : memref<32x16xf32, #tpu.memory_space<vmem>>, vector<32x16xf32>
    %cst = arith.constant dense<0.000000e+00> : vector<128x16xf32>
    %2 = tpu.matmul %0, %1, %cst {dimension_numbers = #tpu.dot_dimension_numbers<[1], [0], [0], [1], [0, 0, 1, 1], [], []>} : vector<128x32xf32>, vector<32x16xf32>, vector<128x16xf32> -> vector<128x16xf32>
    %3 = arith.truncf %2 : vector<128x16xf32> to vector<128x16xbf16>
    %c0_3 = arith.constant 0 : index
    %c0_4 = arith.constant 0 : index
    %4 = vector.load %arg3[%c0_3, %c0_4] : memref<128x16xbf16, #tpu.memory_space<vmem>>, vector<128x16xbf16>
    tpu.vector_store %arg3[%c0_3, %c0_4], %3 {strides = array<i32>} : memref<128x16xbf16, #tpu.memory_space<vmem>>, vector<128x16xbf16>,
    return
  }
  func.func @transform_0(%arg0: i32) -> (i32, i32) {
    %c0_i32 = arith.constant 0 : i32
    %c0_i32_0 = arith.constant 0 : i32
    return %arg0, %c0_i32 : i32, i32
  }
  func.func @transform_1(%arg0: i32) -> (i32, i32) {
    %c0_i32 = arith.constant 0 : i32
    %c0_i32_0 = arith.constant 0 : i32
    %c0_i32_1 = arith.constant 0 : i32
    return %c0_i32, %c0_i32_0 : i32, i32
  }
  func.func @transform_2(%arg0: i32) -> (i32, i32) {
    %c0_i32 = arith.constant 0 : i32
    %c0_i32_0 = arith.constant 0 : i32
    return %arg0, %c0_i32 : i32, i32
  }
}

module attributes {stable_mosaic.version = 11 : i64} {
  func.func @_aggregate_kernel(%arg0: i32, %arg1: i32, %arg2: memref<128x128xbf16, #tpu.memory_space<vmem>>, %arg3: memref<128x16xbf16, #tpu.memory_space<vmem>>, %arg4: memref<128x16xf32, #tpu.memory_space<vmem>>, %arg5: memref<128x16xf32, #tpu.memory_space<vmem>>) attributes {dimension_semantics = [#tpu.dimension_semantics<parallel>, #tpu.dimension_semantics<arbitrary>], iteration_bounds = array<i64: 1, 1>, scalar_prefetch = 0 : i64, scratch_operands = 1 : i64, tpu.core_type = #tpu.core_type<tc>, window_params = [{transform_indices = @transform_0, window_bounds = array<i64: 128, 128>}, {transform_indices = @transform_1, window_bounds = array<i64: 128, 16>}, {transform_indices = @transform_2, window_bounds = array<i64: 128, 16>}]} {
    %c0_i32 = arith.constant 0 : i32
    %0 = arith.cmpi eq, %arg1, %c0_i32 : i32
    %1 = arith.extui %0 : i1 to i32
    %c0_i32_0 = arith.constant 0 : i32
    %2 = arith.cmpi ne, %1, %c0_i32_0 : i32
    scf.if %2 {
      %cst_10 = arith.constant 0.000000e+00 : f32
      %12 = vector.broadcast %cst_10 : f32 to vector<128x16xf32>
      %c0_11 = arith.constant 0 : index
      %c0_12 = arith.constant 0 : index
      %13 = vector.load %arg5[%c0_11, %c0_12] : memref<128x16xf32, #tpu.memory_space<vmem>>, vector<128x16xf32>
      tpu.vector_store %arg5[%c0_11, %c0_12], %12 {strides = array<i32>} : memref<128x16xf32, #tpu.memory_space<vmem>>, vector<128x16xf32>,
    } else {
    }
    %c0 = arith.constant 0 : index
    %c0_1 = arith.constant 0 : index
    %3 = vector.load %arg5[%c0, %c0_1] : memref<128x16xf32, #tpu.memory_space<vmem>>, vector<128x16xf32>
    %c0_2 = arith.constant 0 : index
    %c0_3 = arith.constant 0 : index
    %4 = vector.load %arg2[%c0_2, %c0_3] : memref<128x128xbf16, #tpu.memory_space<vmem>>, vector<128x128xbf16>
    %c0_4 = arith.constant 0 : index
    %c0_5 = arith.constant 0 : index
    %5 = vector.load %arg3[%c0_4, %c0_5] : memref<128x16xbf16, #tpu.memory_space<vmem>>, vector<128x16xbf16>
    %cst = arith.constant dense<0.000000e+00> : vector<128x16xf32>
    %6 = tpu.matmul %4, %5, %cst {dimension_numbers = #tpu.dot_dimension_numbers<[1], [0], [0], [1], [0, 0, 1, 1], [], []>} : vector<128x128xbf16>, vector<128x16xbf16>, vector<128x16xf32> -> vector<128x16xf32>
    %7 = arith.addf %3, %6 : vector<128x16xf32>
    %c0_6 = arith.constant 0 : index
    %c0_7 = arith.constant 0 : index
    %8 = vector.load %arg5[%c0_6, %c0_7] : memref<128x16xf32, #tpu.memory_space<vmem>>, vector<128x16xf32>
    tpu.vector_store %arg5[%c0_6, %c0_7], %7 {strides = array<i32>} : memref<128x16xf32, #tpu.memory_space<vmem>>, vector<128x16xf32>,
    %c0_i32_8 = arith.constant 0 : i32
    %9 = arith.cmpi eq, %arg1, %c0_i32_8 : i32
    %10 = arith.extui %9 : i1 to i32
    %c0_i32_9 = arith.constant 0 : i32
    %11 = arith.cmpi ne, %10, %c0_i32_9 : i32
    scf.if %11 {
      %c0_10 = arith.constant 0 : index
      %c0_11 = arith.constant 0 : index
      %12 = vector.load %arg5[%c0_10, %c0_11] : memref<128x16xf32, #tpu.memory_space<vmem>>, vector<128x16xf32>
      %c0_12 = arith.constant 0 : index
      %c0_13 = arith.constant 0 : index
      %13 = vector.load %arg4[%c0_12, %c0_13] : memref<128x16xf32, #tpu.memory_space<vmem>>, vector<128x16xf32>
      tpu.vector_store %arg4[%c0_12, %c0_13], %12 {strides = array<i32>} : memref<128x16xf32, #tpu.memory_space<vmem>>, vector<128x16xf32>,
    } else {
    }
    return
  }
  func.func @transform_0(%arg0: i32, %arg1: i32) -> (i32, i32) {
    %c0_i32 = arith.constant 0 : i32
    return %arg0, %arg1 : i32, i32
  }
  func.func @transform_1(%arg0: i32, %arg1: i32) -> (i32, i32) {
    %c0_i32 = arith.constant 0 : i32
    %c0_i32_0 = arith.constant 0 : i32
    return %arg1, %c0_i32 : i32, i32
  }
  func.func @transform_2(%arg0: i32, %arg1: i32) -> (i32, i32) {
    %c0_i32 = arith.constant 0 : i32
    %c0_i32_0 = arith.constant 0 : i32
    return %arg0, %c0_i32 : i32, i32
  }
}

</mosaic_0001>

<bundles_post_ra>
// kernel: graph_convolution.2
= control target key start
LH: loop header
LB: loop body
LE: loop exit
PB: predicated region body
PF: predicated region fallthrough
CT: control target
= control target key end

     0   :  { %vm31_vm0 = vcmask 261120   ;;  %vm161_vm1 = vcmask 125952   ;;  %s365_s1 = inlined_call_operand.vmem [shape: f32[32,16], index: 1, kind: input, shape index: {}]   ;;  %s366_s0 = inlined_call_operand.vmem [shape: f32[128,32], index: 0, kind: input, shape index: {}]   ;;  %s367_s2 = inlined_call_operand.vmem [shape: bf16[128,16], index: 2, kind: output, shape index: {}]  }
   0x1   :  { %v30_v0 = vld [vmem:[%s365_s1 + $0x18] sm:$0xff]  ;;  %v29_v1 = vld [vmem:[%s365_s1 + $0x10] sm:$0xff]  ;;  %v28_v2 = vld [vmem:[%s365_s1 + $0x8] sm:$0xff] }
   0x2   :  { %199 = vmatpush.msra.mxu2 %v30_v0  ;;  %200 = vmatpush.msra.mxu3 %v30_v0  ;;  %v27_v3 = vld [vmem:[%s365_s1] sm:$0xff]  ;;  %v20_v8 = vld [vmem:[%s366_s0 + $0x48] sm:$0xff]  ;;  %v21_v12 = vld [vmem:[%s366_s0 + $0x50] sm:$0xff] }
   0x3   :  { %92 = vmatpush.msra.mxu0 %v30_v0  ;;  %198 = vmatpush.msra.mxu1 %v30_v0  ;;  %v19_v4 = vld [vmem:[%s366_s0 + $0x40] sm:$0xff]  ;;  %v24_v9 = vld [vmem:[%s366_s0 + $0x68] sm:$0xff]  ;;  %v25_v13 = vld [vmem:[%s366_s0 + $0x70] sm:$0xff] }
   0x4   :  { %202 = vmatpush.msra.mxu2 %v29_v1  ;;  %203 = vmatpush.msra.mxu3 %v29_v1  ;;  %v23_v5 = vld [vmem:[%s366_s0 + $0x60] sm:$0xff]  ;;  %v12_v10 = vld [vmem:[%s366_s0 + $0x8] sm:$0xff]  ;;  %v13_v14 = vld [vmem:[%s366_s0 + $0x10] sm:$0xff] }
   0x5   :  { %93 = vmatpush.msra.mxu0 %v29_v1  ;;  %201 = vmatpush.msra.mxu1 %v29_v1  ;;  %v11_v6 = vld [vmem:[%s366_s0] sm:$0xff]  ;;  %v16_v11 = vld [vmem:[%s366_s0 + $0x28] sm:$0xff]  ;;  %v17_v15 = vld [vmem:[%s366_s0 + $0x30] sm:$0xff] }
   0x6   :  { %205 = vmatpush.msra.mxu2 %v28_v2  ;;  %206 = vmatpush.msra.mxu3 %v28_v2  ;;  %v15_v7 = vld [vmem:[%s366_s0 + $0x20] sm:$0xff]  ;;  %v22_v16 = vld [vmem:[%s366_s0 + $0x58] sm:$0xff] }
   0x7   :  { %94 = vmatpush.msra.mxu0 %v28_v2  ;;  %204 = vmatpush.msra.mxu1 %v28_v2  ;;  %v26_v17 = vld [vmem:[%s366_s0 + $0x78] sm:$0xff] }
   0x8   :  { %208 = vmatpush.msra.mxu2 %v27_v3  ;;  %209 = vmatpush.msra.mxu3 %v27_v3  ;;  %v14_v18 = vld [vmem:[%s366_s0 + $0x18] sm:$0xff] }
   0x9   :  { %190 = vmatmul.msk.f32.vlgmr.msra.gmra.mxu2 %vm31_vm0, %v19_v4  ;;  %194 = vmatmul.msk.f32.vlgmr.msra.gmra.mxu3 %vm31_vm0, %v23_v5  ;;  %v18_v19 = vld [vmem:[%s366_s0 + $0x38] sm:$0xff] }
   0xa   :  { %95 = vmatpush.msra.mxu0 %v27_v3  ;;  %207 = vmatpush.msra.mxu1 %v27_v3 }
   0xb   :  { %182 = vmatmul.msk.f32.vlgmr.msra.gmra.mxu0 %vm31_vm0, %v11_v6  ;;  %186 = vmatmul.msk.f32.vlgmr.msra.gmra.mxu1 %vm31_vm0, %v15_v7 }
  0x11   :  { %191 = vmatmul.msk.f32.gmra.mxu2 %vm31_vm0, %v20_v8  ;;  %195 = vmatmul.msk.f32.gmra.mxu3 %vm31_vm0, %v24_v9 }
  0x13   :  { %183 = vmatmul.msk.f32.gmra.mxu0 %vm31_vm0, %v12_v10  ;;  %187 = vmatmul.msk.f32.gmra.mxu1 %vm31_vm0, %v16_v11 }
  0x19   :  { %192 = vmatmul.msk.f32.gmra.mxu2 %vm31_vm0, %v21_v12  ;;  %196 = vmatmul.msk.f32.gmra.mxu3 %vm31_vm0, %v25_v13 }
  0x1b   :  { %184 = vmatmul.msk.f32.gmra.mxu0 %vm31_vm0, %v13_v14  ;;  %188 = vmatmul.msk.f32.gmra.mxu1 %vm31_vm0, %v17_v15 }
  0x21   :  { %193 = vmatmul.msk.f32.gmra.mxu2 %vm31_vm0, %v22_v16  ;;  %197 = vmatmul.msk.f32.gmra.mxu3 %vm31_vm0, %v26_v17 }
  0x23   :  { %185 = vmatmul.msk.f32.gmra.mxu0 %vm31_vm0, %v14_v18  ;;  %189 = vmatmul.msk.f32.gmra.mxu1 %vm31_vm0, %v18_v19 }
  0x88   :  { %v97_v20 = vpop.f32.mrf.mxu0  ;;  %v109_v21 = vpop.f32.mrf.mxu1 }
  0x89   :  { %v145_v22 = vpack.c.bf16 %v97_v20, %v97_v20  ;;  %v149_v23 = vpack.c.bf16 %v109_v21, %v109_v21 }
  0x8b   :  { %162 = vst.msk [vmem:[%s367_s2] sm:$0xf] %vm161_vm1, %v145_v22 }
  0x8c   :  { %166 = vst.msk [vmem:[%s367_s2 + $0x10] sm:$0xf] %vm161_vm1, %v149_v23  ;;  %v121_v24 = vpop.f32.mrf.mxu2  ;;  %v133_v25 = vpop.f32.mrf.mxu3 }
  0x8d   :  { %v153_v26 = vpack.c.bf16 %v121_v24, %v121_v24  ;;  %v157_v27 = vpack.c.bf16 %v133_v25, %v133_v25 }
  0x8f   :  { %170 = vst.msk [vmem:[%s367_s2 + $0x20] sm:$0xf] %vm161_vm1, %v153_v26 }
  0x90   :  { %174 = vst.msk [vmem:[%s367_s2 + $0x30] sm:$0xf] %vm161_vm1, %v157_v27  ;;  %v100_v28 = vpop.f32.mrf.mxu0  ;;  %v112_v29 = vpop.f32.mrf.mxu1 }
  0x91   :  { %v146_v30 = vpack.c.bf16 %v100_v28, %v100_v28  ;;  %v150_v31 = vpack.c.bf16 %v112_v29, %v112_v29 }
  0x93   :  { %163 = vst.msk [vmem:[%s367_s2 + $0x4] sm:$0xf] %vm161_vm1, %v146_v30 }
  0x94   :  { %167 = vst.msk [vmem:[%s367_s2 + $0x14] sm:$0xf] %vm161_vm1, %v150_v31  ;;  %v124_v32 = vpop.f32.mrf.mxu2  ;;  %v136_v33 = vpop.f32.mrf.mxu3 }
  0x95   :  { %v154_v34 = vpack.c.bf16 %v124_v32, %v124_v32  ;;  %v158_v35 = vpack.c.bf16 %v136_v33, %v136_v33 }
  0x97   :  { %171 = vst.msk [vmem:[%s367_s2 + $0x24] sm:$0xf] %vm161_vm1, %v154_v34 }
  0x98   :  { %175 = vst.msk [vmem:[%s367_s2 + $0x34] sm:$0xf] %vm161_vm1, %v158_v35  ;;  %v103_v36 = vpop.f32.mrf.mxu0  ;;  %v115_v37 = vpop.f32.mrf.mxu1 }
  0x99   :  { %v147_v38 = vpack.c.bf16 %v103_v36, %v103_v36  ;;  %v151_v39 = vpack.c.bf16 %v115_v37, %v115_v37 }
  0x9b   :  { %164 = vst.msk [vmem:[%s367_s2 + $0x8] sm:$0xf] %vm161_vm1, %v147_v38 }
  0x9c   :  { %168 = vst.msk [vmem:[%s367_s2 + $0x18] sm:$0xf] %vm161_vm1, %v151_v39  ;;  %v127_v40 = vpop.f32.mrf.mxu2  ;;  %v139_v41 = vpop.f32.mrf.mxu3 }
  0x9d   :  { %v155_v42 = vpack.c.bf16 %v127_v40, %v127_v40  ;;  %v159_v43 = vpack.c.bf16 %v139_v41, %v139_v41 }
  0x9f   :  { %172 = vst.msk [vmem:[%s367_s2 + $0x28] sm:$0xf] %vm161_vm1, %v155_v42 }
  0xa0   :  { %176 = vst.msk [vmem:[%s367_s2 + $0x38] sm:$0xf] %vm161_vm1, %v159_v43  ;;  %v106_v44 = vpop.f32.mrf.mxu0  ;;  %v118_v45 = vpop.f32.mrf.mxu1 }
  0xa1   :  { %v148_v46 = vpack.c.bf16 %v106_v44, %v106_v44  ;;  %v152_v47 = vpack.c.bf16 %v118_v45, %v118_v45 }
  0xa3   :  { %165 = vst.msk [vmem:[%s367_s2 + $0xc] sm:$0xf] %vm161_vm1, %v148_v46 }
  0xa4   :  { %169 = vst.msk [vmem:[%s367_s2 + $0x1c] sm:$0xf] %vm161_vm1, %v152_v47  ;;  %v130_v48 = vpop.f32.mrf.mxu2  ;;  %v142_v49 = vpop.f32.mrf.mxu3 }
  0xa5   :  { %v156_v50 = vpack.c.bf16 %v130_v48, %v130_v48  ;;  %v160_v51 = vpack.c.bf16 %v142_v49, %v142_v49 }
  0xa7   :  { %173 = vst.msk [vmem:[%s367_s2 + $0x2c] sm:$0xf] %vm161_vm1, %v156_v50 }
  0xa8   :  { %177 = vst.msk [vmem:[%s367_s2 + $0x3c] sm:$0xf] %vm161_vm1, %v160_v51 }

// kernel: graph_convolution.3
= control target key start
LH: loop header
LB: loop body
LE: loop exit
PB: predicated region body
PF: predicated region fallthrough
CT: control target
= control target key end

     0   :  { %vm15_vm0 = vcmask 130048   ;;  %v402_v6 = vmov 0.0   ;;  %s562_s1 = inlined_call_operand.vmem [shape: bf16[128,16], index: 1, kind: input, shape index: {}]   ;;  %s563_s0 = inlined_call_operand.vmem [shape: bf16[128,128], index: 0, kind: input, shape index: {}]   ;;  %s564_s2 = inlined_call_operand.vmem [shape: f32[128,16], index: 2, kind: output, shape index: {}]  }
   0x1   :  { %v376_v0 = vld [vmem:[%s562_s1 + $0x38] sm:$0xff]  ;;  %v375_v1 = vld [vmem:[%s562_s1 + $0x30] sm:$0xff]  ;;  %v374_v2 = vld [vmem:[%s562_s1 + $0x28] sm:$0xff]  ;;  %16 = vst.msk [vmem:[#allocation2] sm:$0xff] %vm15_vm0, %v402_v6 }
   0x2   :  { %176 = vmatpush.bf16.msra.mxu0 %v376_v0  ;;  %377 = vmatpush.bf16.msra.mxu1 %v376_v0  ;;  %v373_v3 = vld [vmem:[%s562_s1 + $0x20] sm:$0xff]  ;;  %v372_v4 = vld [vmem:[%s562_s1 + $0x18] sm:$0xff]  ;;  %v371_v5 = vld [vmem:[%s562_s1 + $0x10] sm:$0xff]  ;;  %17 = vst.msk [vmem:[#allocation2 + $0x8] sm:$0xff] %vm15_vm0, %v402_v6 }
   0x3   :  { %378 = vmatpush.bf16.msra.mxu2 %v376_v0  ;;  %379 = vmatpush.bf16.msra.mxu3 %v376_v0  ;;  %18 = vst.msk [vmem:[#allocation2 + $0x10] sm:$0xff] %vm15_vm0, %v402_v6  ;;  %v370_v7 = vld [vmem:[%s562_s1 + $0x8] sm:$0xff]  ;;  %v369_v8 = vld [vmem:[%s562_s1] sm:$0xff]  ;;  %v363_v10 = vld [vmem:[%s563_s0 + $0x10] sm:$0xff] }
   0x4   :  { %19 = vst.msk [vmem:[#allocation2 + $0x18] sm:$0xff] %vm15_vm0, %v402_v6  ;;  %v361_v9 = vld [vmem:[%s563_s0] sm:$0xff]  ;;  %v367_v12 = vld [vmem:[%s563_s0 + $0x30] sm:$0xff]  ;;  %v362_v13 = vld [vmem:[%s563_s0 + $0x8] sm:$0xff] }
   0x5   :  { %20 = vst.msk [vmem:[#allocation2 + $0x20] sm:$0xff] %vm15_vm0, %v402_v6  ;;  %v365_v11 = vld [vmem:[%s563_s0 + $0x20] sm:$0xff]  ;;  %v364_v14 = vld [vmem:[%s563_s0 + $0x18] sm:$0xff]  ;;  %v366_v15 = vld [vmem:[%s563_s0 + $0x28] sm:$0xff] }
   0x6   :  { %177 = vmatpush.bf16.msra.mxu0 %v375_v1  ;;  %380 = vmatpush.bf16.msra.mxu1 %v375_v1  ;;  %21 = vst.msk [vmem:[#allocation2 + $0x28] sm:$0xff] %vm15_vm0, %v402_v6  ;;  %v368_v16 = vld [vmem:[%s563_s0 + $0x38] sm:$0xff] }
   0x7   :  { %381 = vmatpush.bf16.msra.mxu2 %v375_v1  ;;  %382 = vmatpush.bf16.msra.mxu3 %v375_v1  ;;  %22 = vst.msk [vmem:[#allocation2 + $0x30] sm:$0xff] %vm15_vm0, %v402_v6 }
   0x8   :  { %23 = vst.msk [vmem:[#allocation2 + $0x38] sm:$0xff] %vm15_vm0, %v402_v6  ;;  %v32_v17 = vld [vmem:[#allocation2] sm:$0xff] }
   0x9   :  { %24 = vst.msk [vmem:[#allocation2 + $0x40] sm:$0xff] %vm15_vm0, %v402_v6  ;;  %v33_v27 = vld [vmem:[#allocation2 + $0x8] sm:$0xff] }
   0xa   :  { %178 = vmatpush.bf16.msra.mxu0 %v374_v2  ;;  %383 = vmatpush.bf16.msra.mxu1 %v374_v2  ;;  %25 = vst.msk [vmem:[#allocation2 + $0x48] sm:$0xff] %vm15_vm0, %v402_v6  ;;  %v34_v46 = vld [vmem:[#allocation2 + $0x10] sm:$0xff] }
   0xb   :  { %384 = vmatpush.bf16.msra.mxu2 %v374_v2  ;;  %385 = vmatpush.bf16.msra.mxu3 %v374_v2  ;;  %26 = vst.msk [vmem:[#allocation2 + $0x50] sm:$0xff] %vm15_vm0, %v402_v6  ;;  %v35_v57 = vld [vmem:[#allocation2 + $0x18] sm:$0xff] }
   0xc   :  { %27 = vst.msk [vmem:[#allocation2 + $0x58] sm:$0xff] %vm15_vm0, %v402_v6  ;;  %v36_v18 = vld [vmem:[#allocation2 + $0x20] sm:$0xff] }
   0xd   :  { %28 = vst.msk [vmem:[#allocation2 + $0x60] sm:$0xff] %vm15_vm0, %v402_v6  ;;  %v37_v30 = vld [vmem:[#allocation2 + $0x28] sm:$0xff] }
   0xe   :  { %179 = vmatpush.bf16.msra.mxu0 %v373_v3  ;;  %386 = vmatpush.bf16.msra.mxu1 %v373_v3  ;;  %29 = vst.msk [vmem:[#allocation2 + $0x68] sm:$0xff] %vm15_vm0, %v402_v6  ;;  %v38_v47 = vld [vmem:[#allocation2 + $0x30] sm:$0xff] }
   0xf   :  { %387 = vmatpush.bf16.msra.mxu2 %v373_v3  ;;  %388 = vmatpush.bf16.msra.mxu3 %v373_v3  ;;  %30 = vst.msk [vmem:[#allocation2 + $0x70] sm:$0xff] %vm15_vm0, %v402_v6  ;;  %v39_v60 = vld [vmem:[#allocation2 + $0x38] sm:$0xff] }
  0x10   :  { %31 = vst.msk [vmem:[#allocation2 + $0x78] sm:$0xff] %vm15_vm0, %v402_v6  ;;  %v40_v23 = vld [vmem:[#allocation2 + $0x40] sm:$0xff] }
  0x11   :  { %v41_v37 = vld [vmem:[#allocation2 + $0x48] sm:$0xff] }
  0x12   :  { %180 = vmatpush.bf16.msra.mxu0 %v372_v4  ;;  %389 = vmatpush.bf16.msra.mxu1 %v372_v4  ;;  %v42_v52 = vld [vmem:[#allocation2 + $0x50] sm:$0xff] }
  0x13   :  { %390 = vmatpush.bf16.msra.mxu2 %v372_v4  ;;  %391 = vmatpush.bf16.msra.mxu3 %v372_v4  ;;  %v43_v3 = vld [vmem:[#allocation2 + $0x58] sm:$0xff] }
  0x14   :  { %v44_v24 = vld [vmem:[#allocation2 + $0x60] sm:$0xff] }
  0x15   :  { %v45_v38 = vld [vmem:[#allocation2 + $0x68] sm:$0xff] }
  0x16   :  { %181 = vmatpush.bf16.msra.mxu0 %v371_v5  ;;  %392 = vmatpush.bf16.msra.mxu1 %v371_v5  ;;  %v46_v54 = vld [vmem:[#allocation2 + $0x70] sm:$0xff] }
  0x17   :  { %393 = vmatpush.bf16.msra.mxu2 %v371_v5  ;;  %394 = vmatpush.bf16.msra.mxu3 %v371_v5  ;;  %v47_v4 = vld [vmem:[#allocation2 + $0x78] sm:$0xff] }
  0x1a   :  { %182 = vmatpush.bf16.msra.mxu0 %v370_v7  ;;  %395 = vmatpush.bf16.msra.mxu1 %v370_v7 }
  0x1b   :  { %396 = vmatpush.bf16.msra.mxu2 %v370_v7  ;;  %397 = vmatpush.bf16.msra.mxu3 %v370_v7 }
  0x1e   :  { %183 = vmatpush.bf16.msra.mxu0 %v369_v8  ;;  %398 = vmatpush.bf16.msra.mxu1 %v369_v8 }
  0x1f   :  { %399 = vmatpush.bf16.msra.mxu2 %v369_v8  ;;  %400 = vmatpush.bf16.msra.mxu3 %v369_v8 }
  0x21   :  { %184 = vmatmul.bf16.vlgmr.msra.gmra.mxu0 %v361_v9  ;;  %194 = vmatmul.bf16.vlgmr.msra.gmra.mxu1 %v363_v10 }
  0x22   :  { %204 = vmatmul.bf16.vlgmr.msra.gmra.mxu2 %v365_v11  ;;  %214 = vmatmul.bf16.vlgmr.msra.gmra.mxu3 %v367_v12 }
  0x31   :  { %189 = vmatmul.bf16.gmra.mxu0 %v362_v13  ;;  %199 = vmatmul.bf16.gmra.mxu1 %v364_v14 }
  0x32   :  { %209 = vmatmul.bf16.gmra.mxu2 %v366_v15  ;;  %219 = vmatmul.bf16.gmra.mxu3 %v368_v16 }
  0x9e   :  { %v185_v19 = vpop.f32.mrf.mxu0  ;;  %v195_v20 = vpop.f32.mrf.mxu1 }
  0x9f   :  { %v225_v21 = vadd.f32 %v185_v19, %v32_v17  ;;  %v229_v22 = vadd.f32 %v195_v20, %v36_v18 }
  0xa1   :  { %242 = vst.msk [vmem:[#allocation2] sm:$0xff] %vm15_vm0, %v225_v21 }
  0xa2   :  { %246 = vst.msk [vmem:[#allocation2 + $0x20] sm:$0xff] %vm15_vm0, %v229_v22 }
  0xa5   :  { %v205_v25 = vpop.f32.mrf.mxu2  ;;  %v215_v26 = vpop.f32.mrf.mxu3 }
  0xa6   :  { %v233_v28 = vadd.f32 %v205_v25, %v40_v23  ;;  %v187_v29 = vpop.f32.mrf.mxu0  ;;  %v197_v31 = vpop.f32.mrf.mxu1  ;;  %v237_v32 = vadd.f32 %v215_v26, %v44_v24 }
  0xa7   :  { %v226_v34 = vadd.f32 %v187_v29, %v33_v27  ;;  %v230_v36 = vadd.f32 %v197_v31, %v37_v30 }
  0xa8   :  { %v261_v33 = vld [vmem:[#allocation2] sm:$0xff]  ;;  %250 = vst.msk [vmem:[#allocation2 + $0x40] sm:$0xff] %vm15_vm0, %v233_v28 }
  0xa9   :  { %277 = vst.msk [vmem:[%s564_s2] sm:$0xff] %vm15_vm0, %v261_v33  ;;  %v265_v35 = vld [vmem:[#allocation2 + $0x20] sm:$0xff] }
  0xaa   :  { %281 = vst.msk [vmem:[%s564_s2 + $0x20] sm:$0xff] %vm15_vm0, %v265_v35 }
  0xab   :  { %254 = vst.msk [vmem:[#allocation2 + $0x60] sm:$0xff] %vm15_vm0, %v237_v32 }
  0xac   :  { %243 = vst.msk [vmem:[#allocation2 + $0x8] sm:$0xff] %vm15_vm0, %v226_v34 }
  0xad   :  { %247 = vst.msk [vmem:[#allocation2 + $0x28] sm:$0xff] %vm15_vm0, %v230_v36  ;;  %v207_v39 = vpop.f32.mrf.mxu2  ;;  %v217_v40 = vpop.f32.mrf.mxu3 }
  0xae   :  { %v234_v41 = vadd.f32 %v207_v39, %v41_v37  ;;  %v238_v42 = vadd.f32 %v217_v40, %v45_v38  ;;  %v190_v43 = vpop.f32.mrf.mxu0  ;;  %v200_v44 = vpop.f32.mrf.mxu1 }
  0xaf   :  { %v269_v45 = vld [vmem:[#allocation2 + $0x40] sm:$0xff]  ;;  %v227_v49 = vadd.f32 %v190_v43, %v34_v46  ;;  %v231_v51 = vadd.f32 %v200_v44, %v38_v47 }
  0xb0   :  { %285 = vst.msk [vmem:[%s564_s2 + $0x40] sm:$0xff] %vm15_vm0, %v269_v45 }
  0xb1   :  { %251 = vst.msk [vmem:[#allocation2 + $0x48] sm:$0xff] %vm15_vm0, %v234_v41 }
  0xb2   :  { %v273_v48 = vld [vmem:[#allocation2 + $0x60] sm:$0xff]  ;;  %255 = vst.msk [vmem:[#allocation2 + $0x68] sm:$0xff] %vm15_vm0, %v238_v42 }
  0xb3   :  { %289 = vst.msk [vmem:[%s564_s2 + $0x60] sm:$0xff] %vm15_vm0, %v273_v48  ;;  %v262_v50 = vld [vmem:[#allocation2 + $0x8] sm:$0xff] }
  0xb4   :  { %278 = vst.msk [vmem:[%s564_s2 + $0x8] sm:$0xff] %vm15_vm0, %v262_v50  ;;  %v266_v53 = vld [vmem:[#allocation2 + $0x28] sm:$0xff] }
  0xb5   :  { %282 = vst.msk [vmem:[%s564_s2 + $0x28] sm:$0xff] %vm15_vm0, %v266_v53  ;;  %v210_v55 = vpop.f32.mrf.mxu2  ;;  %v220_v56 = vpop.f32.mrf.mxu3 }
  0xb6   :  { %244 = vst.msk [vmem:[#allocation2 + $0x10] sm:$0xff] %vm15_vm0, %v227_v49  ;;  %v235_v58 = vadd.f32 %v210_v55, %v42_v52  ;;  %v192_v59 = vpop.f32.mrf.mxu0  ;;  %v202_v61 = vpop.f32.mrf.mxu1  ;;  %v239_v62 = vadd.f32 %v220_v56, %v46_v54 }
  0xb7   :  { %248 = vst.msk [vmem:[#allocation2 + $0x30] sm:$0xff] %vm15_vm0, %v231_v51  ;;  %v228_v0 = vadd.f32 %v192_v59, %v35_v57  ;;  %v232_v2 = vadd.f32 %v202_v61, %v39_v60 }
  0xb8   :  { %v270_v63 = vld [vmem:[#allocation2 + $0x48] sm:$0xff]  ;;  %252 = vst.msk [vmem:[#allocation2 + $0x50] sm:$0xff] %vm15_vm0, %v235_v58 }
  0xb9   :  { %286 = vst.msk [vmem:[%s564_s2 + $0x48] sm:$0xff] %vm15_vm0, %v270_v63  ;;  %v274_v1 = vld [vmem:[#allocation2 + $0x68] sm:$0xff] }
  0xba   :  { %290 = vst.msk [vmem:[%s564_s2 + $0x68] sm:$0xff] %vm15_vm0, %v274_v1 }
  0xbb   :  { %256 = vst.msk [vmem:[#allocation2 + $0x70] sm:$0xff] %vm15_vm0, %v239_v62 }
  0xbc   :  { %245 = vst.msk [vmem:[#allocation2 + $0x18] sm:$0xff] %vm15_vm0, %v228_v0 }
  0xbd   :  { %v263_v5 = vld [vmem:[#allocation2 + $0x10] sm:$0xff]  ;;  %249 = vst.msk [vmem:[#allocation2 + $0x38] sm:$0xff] %vm15_vm0, %v232_v2  ;;  %v212_v6 = vpop.f32.mrf.mxu2  ;;  %v222_v7 = vpop.f32.mrf.mxu3 }
  0xbe   :  { %279 = vst.msk [vmem:[%s564_s2 + $0x10] sm:$0xff] %vm15_vm0, %v263_v5  ;;  %v267_v8 = vld [vmem:[#allocation2 + $0x30] sm:$0xff]  ;;  %v236_v9 = vadd.f32 %v212_v6, %v43_v3  ;;  %v240_v10 = vadd.f32 %v222_v7, %v47_v4 }
  0xbf   :  { %283 = vst.msk [vmem:[%s564_s2 + $0x30] sm:$0xff] %vm15_vm0, %v267_v8  ;;  %v271_v11 = vld [vmem:[#allocation2 + $0x50] sm:$0xff] }
  0xc0   :  { %287 = vst.msk [vmem:[%s564_s2 + $0x50] sm:$0xff] %vm15_vm0, %v271_v11 }
  0xc1   :  { %253 = vst.msk [vmem:[#allocation2 + $0x58] sm:$0xff] %vm15_vm0, %v236_v9 }
  0xc2   :  { %v275_v12 = vld [vmem:[#allocation2 + $0x70] sm:$0xff]  ;;  %257 = vst.msk [vmem:[#allocation2 + $0x78] sm:$0xff] %vm15_vm0, %v240_v10 }
  0xc3   :  { %291 = vst.msk [vmem:[%s564_s2 + $0x70] sm:$0xff] %vm15_vm0, %v275_v12  ;;  %v264_v13 = vld [vmem:[#allocation2 + $0x18] sm:$0xff] }
  0xc4   :  { %280 = vst.msk [vmem:[%s564_s2 + $0x18] sm:$0xff] %vm15_vm0, %v264_v13  ;;  %v268_v14 = vld [vmem:[#allocation2 + $0x38] sm:$0xff] }
  0xc5   :  { %284 = vst.msk [vmem:[%s564_s2 + $0x38] sm:$0xff] %vm15_vm0, %v268_v14 }
  0xc8   :  { %v272_v15 = vld [vmem:[#allocation2 + $0x58] sm:$0xff] }
  0xc9   :  { %288 = vst.msk [vmem:[%s564_s2 + $0x58] sm:$0xff] %vm15_vm0, %v272_v15  ;;  %v276_v16 = vld [vmem:[#allocation2 + $0x78] sm:$0xff] }
  0xca   :  { %292 = vst.msk [vmem:[%s564_s2 + $0x78] sm:$0xff] %vm15_vm0, %v276_v16 }

</bundles_post_ra>
